<compile_context>
chip_gen: v7x
topology: tpu7x:2x2x1
jax: 0.10.0
libtpu: 0.0.40
codegen_flags: <defaults>
</compile_context>

<pallas_src>
import jax
import jax.numpy as jnp
from jax import lax
from jax.experimental import pallas as pl
from jax.experimental.pallas import tpu as pltpu


def rnn_classifier_kernel(x_ref,      # [T*B, E] bf16  time-major embedded input
                          wih1_ref,   # [E, H]   bf16
                          w12_ref,    # [H, 2H]  bf16  concat(whh1, wih2) on lanes
                          whh2_ref,   # [H, H]   bf16
                          b1_ref,     # [1, H]   f32   (b_ih_l0 + b_hh_l0)
                          b2_ref,     # [1, H]   f32   (b_ih_l1 + b_hh_l1)
                          wout_ref,   # [H, C]   bf16
                          bout_ref,   # [1, C]   f32
                          out_ref):   # [B, C]   f32   log-probabilities
    TB, _ = x_ref.shape
    B, _ = out_ref.shape
    T = TB // B
    H = whh2_ref.shape[0]

    # Hoist weights/biases once (single vreg load; no per-step broadcasts).
    w12 = w12_ref[...]
    whh2 = whh2_ref[...]
    b2 = b2_ref[...]

    # ---- Layer 1: hoisted input projection for ALL timesteps (one MXU call) ----
    xp1 = (jnp.dot(x_ref[...], wih1_ref[...],
                   preferred_element_type=jnp.float32)
           + b1_ref[...])                                    # [T*B, H] f32

    # ---- t = 0: both hidden states start at zero -> no recurrent matmuls ----
    h1 = jnp.maximum(xp1[0:B, :], 0.0).astype(jnp.bfloat16)
    y = jnp.dot(h1, w12, preferred_element_type=jnp.float32)   # [B, 2H] f32
    rec1 = y[:, :H]                       # h1[0] @ whh1: feeds h1[1]
    h2 = jnp.maximum(y[:, H:] + b2, 0.0).astype(jnp.bfloat16)  # h1[0] @ wih2 + b2

    # ---- Fused, fully-unrolled time loop (T static) ----
    # Per step: ONE concatenated matmul on the h1 chain + ONE independent
    # matmul on the h2 chain; the scheduler overlaps the two MXU chains.
    for t in range(1, T):
        h1 = jnp.maximum(xp1[t * B:(t + 1) * B, :] + rec1,
                         0.0).astype(jnp.bfloat16)
        y = jnp.dot(h1, w12, preferred_element_type=jnp.float32)      # h1 chain
        h2_rec = jnp.dot(h2, whh2, preferred_element_type=jnp.float32)  # h2 chain
        rec1 = y[:, :H]                                # unused at t == T-1 (DCE'd)
        h2 = jnp.maximum(y[:, H:] + b2 + h2_rec, 0.0).astype(jnp.bfloat16)

    # ---- Classifier head (dropout identity at inference) + log_softmax ----
    logits = (jnp.dot(h2, wout_ref[...],
                      preferred_element_type=jnp.float32)
              + bout_ref[...])                               # [B, C] f32
    m = jnp.max(logits, axis=1, keepdims=True)
    shifted = logits - m
    lse = jnp.log(jnp.sum(jnp.exp(shifted), axis=1, keepdims=True))
    out_ref[...] = shifted - lse


@jax.jit
def rnn_classifier_forward(tokens, params):
    """tokens: int32 [B, T]; returns log-probs [B, n_class]."""
    emb = params["embedding"]                      # [V, E]
    B, T = tokens.shape
    E = emb.shape[1]
    H = params["w_hh_l0"].shape[0]
    C = params["w_out"].shape[0]

    # Gather directly into time-major layout and flatten to [T*B, E] for the
    # hoisted input projection; bf16 halves HBM->VMEM traffic (f32 accumulate).
    x = emb[tokens.T].reshape(T * B, E).astype(jnp.bfloat16)

    # Pre-transpose weights so the kernel computes x @ W; bf16 for the MXU.
    bf_t = lambda w: w.T.astype(jnp.bfloat16)
    wih1 = bf_t(params["w_ih_l0"])                 # [E, H]
    # Concatenated per-step weight: y = h1 @ [whh1 | wih2] -> one MXU call
    # gives both the layer-1 recurrent pre-activation and xp2[t].
    w12 = jnp.concatenate([bf_t(params["w_hh_l0"]),
                           bf_t(params["w_ih_l1"])], axis=1)   # [H, 2H]
    whh2 = bf_t(params["w_hh_l1"])                 # [H, H]
    wout = bf_t(params["w_out"])                   # [H, C]
    b1 = (params["b_ih_l0"] + params["b_hh_l0"]).reshape(1, H)
    b2 = (params["b_ih_l1"] + params["b_hh_l1"]).reshape(1, H)
    bout = params["b_out"].reshape(1, C)

    # TODO(synk): at production sizes, raise the effective batch (M >= 128 for
    # the recurrent matmuls) and/or pad H/C toward 128 so stores are lane-dense
    # and the MXU is not <5% utilized; add a "parallel" batch grid axis for
    # v7x's second TensorCore.
    vmem = pl.BlockSpec(memory_space=pltpu.MemorySpace.VMEM)
    return pl.pallas_call(
        rnn_classifier_kernel,
        out_shape=jax.ShapeDtypeStruct((B, C), jnp.float32),
        in_specs=[vmem] * 8,
        out_specs=vmem,
    )(x, wih1, w12, whh2, b1, b2, wout, bout)


def reference_forward(tokens, params):
    """Pure-JAX reference mirroring the PyTorch forward (eval mode, f32)."""
    x = params["embedding"][tokens]                # [B, T, E]
    B, T, _ = x.shape
    H = params["w_hh_l0"].shape[0]

    def layer(inp, wih, whh, bih, bhh):
        def step(h, x_t):
            h_new = jax.nn.relu(x_t @ wih.T + bih + h @ whh.T + bhh)
            return h_new, h_new
        h0 = jnp.zeros((B, H), jnp.float32)
        _, ys = lax.scan(step, h0, jnp.transpose(inp, (1, 0, 2)))
        return jnp.transpose(ys, (1, 0, 2))

    o1 = layer(x, params["w_ih_l0"], params["w_hh_l0"],
               params["b_ih_l0"], params["b_hh_l0"])
    o2 = layer(o1, params["w_ih_l1"], params["w_hh_l1"],
               params["b_ih_l1"], params["b_hh_l1"])
    last = o2[:, -1, :]
    logits = last @ params["w_out"].T + params["b_out"]
    return jax.nn.log_softmax(logits, axis=1)


def init_params(key, vocab, emb_dim, hidden, n_class):
    ks = jax.random.split(key, 12)
    s = 1.0 / jnp.sqrt(hidden)
    u = lambda k, shape: jax.random.uniform(k, shape, jnp.float32, -s, s)
    return {
        "embedding": jax.random.normal(ks[0], (vocab, emb_dim), jnp.float32),
        "w_ih_l0": u(ks[1], (hidden, emb_dim)),
        "w_hh_l0": u(ks[2], (hidden, hidden)),
        "b_ih_l0": u(ks[3], (hidden,)),
        "b_hh_l0": u(ks[4], (hidden,)),
        "w_ih_l1": u(ks[5], (hidden, hidden)),
        "w_hh_l1": u(ks[6], (hidden, hidden)),
        "b_ih_l1": u(ks[7], (hidden,)),
        "b_hh_l1": u(ks[8], (hidden,)),
        "w_out": u(ks[9], (n_class, hidden)),
        "b_out": u(ks[10], (n_class,)),
    }


if __name__ == "__main__":
    VOCAB, EMB, HIDDEN, SEQ, BATCH, NCLASS = 50, 32, 32, 8, 8, 4

    key = jax.random.PRNGKey(0)
    k_tok, k_par = jax.random.split(key)
    params = init_params(k_par, VOCAB, EMB, HIDDEN, NCLASS)
    tokens = jax.random.randint(k_tok, (BATCH, SEQ), 0, VOCAB, jnp.int32)

    out = jax.block_until_ready(rnn_classifier_forward(tokens, params))
    ref = jax.block_until_ready(reference_forward(tokens, params))

    assert out.shape == (BATCH, NCLASS)
    # Tolerance relaxed vs 1e-5 because matmuls run in bf16 (f32 accumulate).
    assert jnp.allclose(out, ref, atol=2e-2, rtol=2e-2), (out, ref)
    print("KERNEL_OK")
</pallas_src>

<mosaic_0001>
module attributes {stable_mosaic.version = 11 : i64} {
  func.func @rnn_classifier_kernel(%arg0: memref<64x32xbf16, #tpu.memory_space<vmem>>, %arg1: memref<32x32xbf16, #tpu.memory_space<vmem>>, %arg2: memref<32x64xbf16, #tpu.memory_space<vmem>>, %arg3: memref<32x32xbf16, #tpu.memory_space<vmem>>, %arg4: memref<1x32xf32, #tpu.memory_space<vmem>>, %arg5: memref<1x32xf32, #tpu.memory_space<vmem>>, %arg6: memref<32x4xbf16, #tpu.memory_space<vmem>>, %arg7: memref<1x4xf32, #tpu.memory_space<vmem>>, %arg8: memref<8x4xf32, #tpu.memory_space<vmem>>) attributes {dimension_semantics = [], scalar_prefetch = 0 : i64, scratch_operands = 0 : i64, tpu.core_type = #tpu.core_type<tc>} {
    %c0 = arith.constant 0 : index
    %c0_0 = arith.constant 0 : index
    %0 = vector.load %arg2[%c0, %c0_0] : memref<32x64xbf16, #tpu.memory_space<vmem>>, vector<32x64xbf16>
    %c0_1 = arith.constant 0 : index
    %c0_2 = arith.constant 0 : index
    %1 = vector.load %arg3[%c0_1, %c0_2] : memref<32x32xbf16, #tpu.memory_space<vmem>>, vector<32x32xbf16>
    %c0_3 = arith.constant 0 : index
    %c0_4 = arith.constant 0 : index
    %2 = vector.load %arg5[%c0_3, %c0_4] : memref<1x32xf32, #tpu.memory_space<vmem>>, vector<1x32xf32>
    %c0_5 = arith.constant 0 : index
    %c0_6 = arith.constant 0 : index
    %3 = vector.load %arg0[%c0_5, %c0_6] : memref<64x32xbf16, #tpu.memory_space<vmem>>, vector<64x32xbf16>
    %c0_7 = arith.constant 0 : index
    %c0_8 = arith.constant 0 : index
    %4 = vector.load %arg1[%c0_7, %c0_8] : memref<32x32xbf16, #tpu.memory_space<vmem>>, vector<32x32xbf16>
    %cst = arith.constant dense<0.000000e+00> : vector<64x32xf32>
    %5 = tpu.matmul %3, %4, %cst {dimension_numbers = #tpu.dot_dimension_numbers<[1], [0], [0], [1], [0, 0, 1, 1], [], []>} : vector<64x32xbf16>, vector<32x32xbf16>, vector<64x32xf32> -> vector<64x32xf32>
    %c0_9 = arith.constant 0 : index
    %c0_10 = arith.constant 0 : index
    %6 = vector.load %arg4[%c0_9, %c0_10] : memref<1x32xf32, #tpu.memory_space<vmem>>, vector<1x32xf32>
    %7 = vector.broadcast %6 : vector<1x32xf32> to vector<64x32xf32>
    %8 = arith.addf %5, %7 : vector<64x32xf32>
    %9 = vector.extract_strided_slice %8 {offsets = [0, 0], sizes = [8, 32], strides = [1, 1]} : vector<64x32xf32> to vector<8x32xf32>
    %cst_11 = arith.constant 0.000000e+00 : f32
    %10 = vector.broadcast %cst_11 : f32 to vector<8x32xf32>
    %11 = arith.maximumf %9, %10 : vector<8x32xf32>
    %12 = arith.truncf %11 : vector<8x32xf32> to vector<8x32xbf16>
    %cst_12 = arith.constant dense<0.000000e+00> : vector<8x64xf32>
    %13 = tpu.matmul %12, %0, %cst_12 {dimension_numbers = #tpu.dot_dimension_numbers<[1], [0], [0], [1], [0, 0, 1, 1], [], []>} : vector<8x32xbf16>, vector<32x64xbf16>, vector<8x64xf32> -> vector<8x64xf32>
    %14 = vector.extract_strided_slice %13 {offsets = [0, 0], sizes = [8, 32], strides = [1, 1]} : vector<8x64xf32> to vector<8x32xf32>
    %15 = vector.extract_strided_slice %13 {offsets = [0, 32], sizes = [8, 32], strides = [1, 1]} : vector<8x64xf32> to vector<8x32xf32>
    %16 = vector.broadcast %2 : vector<1x32xf32> to vector<8x32xf32>
    %17 = arith.addf %15, %16 : vector<8x32xf32>
    %cst_13 = arith.constant 0.000000e+00 : f32
    %18 = vector.broadcast %cst_13 : f32 to vector<8x32xf32>
    %19 = arith.maximumf %17, %18 : vector<8x32xf32>
    %20 = arith.truncf %19 : vector<8x32xf32> to vector<8x32xbf16>
    %21 = vector.extract_strided_slice %8 {offsets = [8, 0], sizes = [8, 32], strides = [1, 1]} : vector<64x32xf32> to vector<8x32xf32>
    %22 = arith.addf %21, %14 : vector<8x32xf32>
    %cst_14 = arith.constant 0.000000e+00 : f32
    %23 = vector.broadcast %cst_14 : f32 to vector<8x32xf32>
    %24 = arith.maximumf %22, %23 : vector<8x32xf32>
    %25 = arith.truncf %24 : vector<8x32xf32> to vector<8x32xbf16>
    %cst_15 = arith.constant dense<0.000000e+00> : vector<8x64xf32>
    %26 = tpu.matmul %25, %0, %cst_15 {dimension_numbers = #tpu.dot_dimension_numbers<[1], [0], [0], [1], [0, 0, 1, 1], [], []>} : vector<8x32xbf16>, vector<32x64xbf16>, vector<8x64xf32> -> vector<8x64xf32>
    %cst_16 = arith.constant dense<0.000000e+00> : vector<8x32xf32>
    %27 = tpu.matmul %20, %1, %cst_16 {dimension_numbers = #tpu.dot_dimension_numbers<[1], [0], [0], [1], [0, 0, 1, 1], [], []>} : vector<8x32xbf16>, vector<32x32xbf16>, vector<8x32xf32> -> vector<8x32xf32>
    %28 = vector.extract_strided_slice %26 {offsets = [0, 0], sizes = [8, 32], strides = [1, 1]} : vector<8x64xf32> to vector<8x32xf32>
    %29 = vector.extract_strided_slice %26 {offsets = [0, 32], sizes = [8, 32], strides = [1, 1]} : vector<8x64xf32> to vector<8x32xf32>
    %30 = vector.broadcast %2 : vector<1x32xf32> to vector<8x32xf32>
    %31 = arith.addf %29, %30 : vector<8x32xf32>
    %32 = arith.addf %31, %27 : vector<8x32xf32>
    %cst_17 = arith.constant 0.000000e+00 : f32
    %33 = vector.broadcast %cst_17 : f32 to vector<8x32xf32>
    %34 = arith.maximumf %32, %33 : vector<8x32xf32>
    %35 = arith.truncf %34 : vector<8x32xf32> to vector<8x32xbf16>
    %36 = vector.extract_strided_slice %8 {offsets = [16, 0], sizes = [8, 32], strides = [1, 1]} : vector<64x32xf32> to vector<8x32xf32>
    %37 = arith.addf %36, %28 : vector<8x32xf32>
    %cst_18 = arith.constant 0.000000e+00 : f32
    %38 = vector.broadcast %cst_18 : f32 to vector<8x32xf32>
    %39 = arith.maximumf %37, %38 : vector<8x32xf32>
    %40 = arith.truncf %39 : vector<8x32xf32> to vector<8x32xbf16>
    %cst_19 = arith.constant dense<0.000000e+00> : vector<8x64xf32>
    %41 = tpu.matmul %40, %0, %cst_19 {dimension_numbers = #tpu.dot_dimension_numbers<[1], [0], [0], [1], [0, 0, 1, 1], [], []>} : vector<8x32xbf16>, vector<32x64xbf16>, vector<8x64xf32> -> vector<8x64xf32>
    %cst_20 = arith.constant dense<0.000000e+00> : vector<8x32xf32>
    %42 = tpu.matmul %35, %1, %cst_20 {dimension_numbers = #tpu.dot_dimension_numbers<[1], [0], [0], [1], [0, 0, 1, 1], [], []>} : vector<8x32xbf16>, vector<32x32xbf16>, vector<8x32xf32> -> vector<8x32xf32>
    %43 = vector.extract_strided_slice %41 {offsets = [0, 0], sizes = [8, 32], strides = [1, 1]} : vector<8x64xf32> to vector<8x32xf32>
    %44 = vector.extract_strided_slice %41 {offsets = [0, 32], sizes = [8, 32], strides = [1, 1]} : vector<8x64xf32> to vector<8x32xf32>
    %45 = vector.broadcast %2 : vector<1x32xf32> to vector<8x32xf32>
    %46 = arith.addf %44, %45 : vector<8x32xf32>
    %47 = arith.addf %46, %42 : vector<8x32xf32>
    %cst_21 = arith.constant 0.000000e+00 : f32
    %48 = vector.broadcast %cst_21 : f32 to vector<8x32xf32>
    %49 = arith.maximumf %47, %48 : vector<8x32xf32>
    %50 = arith.truncf %49 : vector<8x32xf32> to vector<8x32xbf16>
    %51 = vector.extract_strided_slice %8 {offsets = [24, 0], sizes = [8, 32], strides = [1, 1]} : vector<64x32xf32> to vector<8x32xf32>
    %52 = arith.addf %51, %43 : vector<8x32xf32>
    %cst_22 = arith.constant 0.000000e+00 : f32
    %53 = vector.broadcast %cst_22 : f32 to vector<8x32xf32>
    %54 = arith.maximumf %52, %53 : vector<8x32xf32>
    %55 = arith.truncf %54 : vector<8x32xf32> to vector<8x32xbf16>
    %cst_23 = arith.constant dense<0.000000e+00> : vector<8x64xf32>
    %56 = tpu.matmul %55, %0, %cst_23 {dimension_numbers = #tpu.dot_dimension_numbers<[1], [0], [0], [1], [0, 0, 1, 1], [], []>} : vector<8x32xbf16>, vector<32x64xbf16>, vector<8x64xf32> -> vector<8x64xf32>
    %cst_24 = arith.constant dense<0.000000e+00> : vector<8x32xf32>
    %57 = tpu.matmul %50, %1, %cst_24 {dimension_numbers = #tpu.dot_dimension_numbers<[1], [0], [0], [1], [0, 0, 1, 1], [], []>} : vector<8x32xbf16>, vector<32x32xbf16>, vector<8x32xf32> -> vector<8x32xf32>
    %58 = vector.extract_strided_slice %56 {offsets = [0, 0], sizes = [8, 32], strides = [1, 1]} : vector<8x64xf32> to vector<8x32xf32>
    %59 = vector.extract_strided_slice %56 {offsets = [0, 32], sizes = [8, 32], strides = [1, 1]} : vector<8x64xf32> to vector<8x32xf32>
    %60 = vector.broadcast %2 : vector<1x32xf32> to vector<8x32xf32>
    %61 = arith.addf %59, %60 : vector<8x32xf32>
    %62 = arith.addf %61, %57 : vector<8x32xf32>
    %cst_25 = arith.constant 0.000000e+00 : f32
    %63 = vector.broadcast %cst_25 : f32 to vector<8x32xf32>
    %64 = arith.maximumf %62, %63 : vector<8x32xf32>
    %65 = arith.truncf %64 : vector<8x32xf32> to vector<8x32xbf16>
    %66 = vector.extract_strided_slice %8 {offsets = [32, 0], sizes = [8, 32], strides = [1, 1]} : vector<64x32xf32> to vector<8x32xf32>
    %67 = arith.addf %66, %58 : vector<8x32xf32>
    %cst_26 = arith.constant 0.000000e+00 : f32
    %68 = vector.broadcast %cst_26 : f32 to vector<8x32xf32>
    %69 = arith.maximumf %67, %68 : vector<8x32xf32>
    %70 = arith.truncf %69 : vector<8x32xf32> to vector<8x32xbf16>
    %cst_27 = arith.constant dense<0.000000e+00> : vector<8x64xf32>
    %71 = tpu.matmul %70, %0, %cst_27 {dimension_numbers = #tpu.dot_dimension_numbers<[1], [0], [0], [1], [0, 0, 1, 1], [], []>} : vector<8x32xbf16>, vector<32x64xbf16>, vector<8x64xf32> -> vector<8x64xf32>
    %cst_28 = arith.constant dense<0.000000e+00> : vector<8x32xf32>
    %72 = tpu.matmul %65, %1, %cst_28 {dimension_numbers = #tpu.dot_dimension_numbers<[1], [0], [0], [1], [0, 0, 1, 1], [], []>} : vector<8x32xbf16>, vector<32x32xbf16>, vector<8x32xf32> -> vector<8x32xf32>
    %73 = vector.extract_strided_slice %71 {offsets = [0, 0], sizes = [8, 32], strides = [1, 1]} : vector<8x64xf32> to vector<8x32xf32>
    %74 = vector.extract_strided_slice %71 {offsets = [0, 32], sizes = [8, 32], strides = [1, 1]} : vector<8x64xf32> to vector<8x32xf32>
    %75 = vector.broadcast %2 : vector<1x32xf32> to vector<8x32xf32>
    %76 = arith.addf %74, %75 : vector<8x32xf32>
    %77 = arith.addf %76, %72 : vector<8x32xf32>
    %cst_29 = arith.constant 0.000000e+00 : f32
    %78 = vector.broadcast %cst_29 : f32 to vector<8x32xf32>
    %79 = arith.maximumf %77, %78 : vector<8x32xf32>
    %80 = arith.truncf %79 : vector<8x32xf32> to vector<8x32xbf16>
    %81 = vector.extract_strided_slice %8 {offsets = [40, 0], sizes = [8, 32], strides = [1, 1]} : vector<64x32xf32> to vector<8x32xf32>
    %82 = arith.addf %81, %73 : vector<8x32xf32>
    %cst_30 = arith.constant 0.000000e+00 : f32
    %83 = vector.broadcast %cst_30 : f32 to vector<8x32xf32>
    %84 = arith.maximumf %82, %83 : vector<8x32xf32>
    %85 = arith.truncf %84 : vector<8x32xf32> to vector<8x32xbf16>
    %cst_31 = arith.constant dense<0.000000e+00> : vector<8x64xf32>
    %86 = tpu.matmul %85, %0, %cst_31 {dimension_numbers = #tpu.dot_dimension_numbers<[1], [0], [0], [1], [0, 0, 1, 1], [], []>} : vector<8x32xbf16>, vector<32x64xbf16>, vector<8x64xf32> -> vector<8x64xf32>
    %cst_32 = arith.constant dense<0.000000e+00> : vector<8x32xf32>
    %87 = tpu.matmul %80, %1, %cst_32 {dimension_numbers = #tpu.dot_dimension_numbers<[1], [0], [0], [1], [0, 0, 1, 1], [], []>} : vector<8x32xbf16>, vector<32x32xbf16>, vector<8x32xf32> -> vector<8x32xf32>
    %88 = vector.extract_strided_slice %86 {offsets = [0, 0], sizes = [8, 32], strides = [1, 1]} : vector<8x64xf32> to vector<8x32xf32>
    %89 = vector.extract_strided_slice %86 {offsets = [0, 32], sizes = [8, 32], strides = [1, 1]} : vector<8x64xf32> to vector<8x32xf32>
    %90 = vector.broadcast %2 : vector<1x32xf32> to vector<8x32xf32>
    %91 = arith.addf %89, %90 : vector<8x32xf32>
    %92 = arith.addf %91, %87 : vector<8x32xf32>
    %cst_33 = arith.constant 0.000000e+00 : f32
    %93 = vector.broadcast %cst_33 : f32 to vector<8x32xf32>
    %94 = arith.maximumf %92, %93 : vector<8x32xf32>
    %95 = arith.truncf %94 : vector<8x32xf32> to vector<8x32xbf16>
    %96 = vector.extract_strided_slice %8 {offsets = [48, 0], sizes = [8, 32], strides = [1, 1]} : vector<64x32xf32> to vector<8x32xf32>
    %97 = arith.addf %96, %88 : vector<8x32xf32>
    %cst_34 = arith.constant 0.000000e+00 : f32
    %98 = vector.broadcast %cst_34 : f32 to vector<8x32xf32>
    %99 = arith.maximumf %97, %98 : vector<8x32xf32>
    %100 = arith.truncf %99 : vector<8x32xf32> to vector<8x32xbf16>
    %cst_35 = arith.constant dense<0.000000e+00> : vector<8x64xf32>
    %101 = tpu.matmul %100, %0, %cst_35 {dimension_numbers = #tpu.dot_dimension_numbers<[1], [0], [0], [1], [0, 0, 1, 1], [], []>} : vector<8x32xbf16>, vector<32x64xbf16>, vector<8x64xf32> -> vector<8x64xf32>
    %cst_36 = arith.constant dense<0.000000e+00> : vector<8x32xf32>
    %102 = tpu.matmul %95, %1, %cst_36 {dimension_numbers = #tpu.dot_dimension_numbers<[1], [0], [0], [1], [0, 0, 1, 1], [], []>} : vector<8x32xbf16>, vector<32x32xbf16>, vector<8x32xf32> -> vector<8x32xf32>
    %103 = vector.extract_strided_slice %101 {offsets = [0, 0], sizes = [8, 32], strides = [1, 1]} : vector<8x64xf32> to vector<8x32xf32>
    %104 = vector.extract_strided_slice %101 {offsets = [0, 32], sizes = [8, 32], strides = [1, 1]} : vector<8x64xf32> to vector<8x32xf32>
    %105 = vector.broadcast %2 : vector<1x32xf32> to vector<8x32xf32>
    %106 = arith.addf %104, %105 : vector<8x32xf32>
    %107 = arith.addf %106, %102 : vector<8x32xf32>
    %cst_37 = arith.constant 0.000000e+00 : f32
    %108 = vector.broadcast %cst_37 : f32 to vector<8x32xf32>
    %109 = arith.maximumf %107, %108 : vector<8x32xf32>
    %110 = arith.truncf %109 : vector<8x32xf32> to vector<8x32xbf16>
    %111 = vector.extract_strided_slice %8 {offsets = [56, 0], sizes = [8, 32], strides = [1, 1]} : vector<64x32xf32> to vector<8x32xf32>
    %112 = arith.addf %111, %103 : vector<8x32xf32>
    %cst_38 = arith.constant 0.000000e+00 : f32
    %113 = vector.broadcast %cst_38 : f32 to vector<8x32xf32>
    %114 = arith.maximumf %112, %113 : vector<8x32xf32>
    %115 = arith.truncf %114 : vector<8x32xf32> to vector<8x32xbf16>
    %cst_39 = arith.constant dense<0.000000e+00> : vector<8x64xf32>
    %116 = tpu.matmul %115, %0, %cst_39 {dimension_numbers = #tpu.dot_dimension_numbers<[1], [0], [0], [1], [0, 0, 1, 1], [], []>} : vector<8x32xbf16>, vector<32x64xbf16>, vector<8x64xf32> -> vector<8x64xf32>
    %cst_40 = arith.constant dense<0.000000e+00> : vector<8x32xf32>
    %117 = tpu.matmul %110, %1, %cst_40 {dimension_numbers = #tpu.dot_dimension_numbers<[1], [0], [0], [1], [0, 0, 1, 1], [], []>} : vector<8x32xbf16>, vector<32x32xbf16>, vector<8x32xf32> -> vector<8x32xf32>
    %118 = vector.extract_strided_slice %116 {offsets = [0, 32], sizes = [8, 32], strides = [1, 1]} : vector<8x64xf32> to vector<8x32xf32>
    %119 = vector.broadcast %2 : vector<1x32xf32> to vector<8x32xf32>
    %120 = arith.addf %118, %119 : vector<8x32xf32>
    %121 = arith.addf %120, %117 : vector<8x32xf32>
    %cst_41 = arith.constant 0.000000e+00 : f32
    %122 = vector.broadcast %cst_41 : f32 to vector<8x32xf32>
    %123 = arith.maximumf %121, %122 : vector<8x32xf32>
    %124 = arith.truncf %123 : vector<8x32xf32> to vector<8x32xbf16>
    %c0_42 = arith.constant 0 : index
    %c0_43 = arith.constant 0 : index
    %125 = vector.load %arg6[%c0_42, %c0_43] : memref<32x4xbf16, #tpu.memory_space<vmem>>, vector<32x4xbf16>
    %cst_44 = arith.constant dense<0.000000e+00> : vector<8x4xf32>
    %126 = tpu.matmul %124, %125, %cst_44 {dimension_numbers = #tpu.dot_dimension_numbers<[1], [0], [0], [1], [0, 0, 1, 1], [], []>} : vector<8x32xbf16>, vector<32x4xbf16>, vector<8x4xf32> -> vector<8x4xf32>
    %c0_45 = arith.constant 0 : index
    %c0_46 = arith.constant 0 : index
    %127 = vector.load %arg7[%c0_45, %c0_46] : memref<1x4xf32, #tpu.memory_space<vmem>>, vector<1x4xf32>
    %128 = vector.broadcast %127 : vector<1x4xf32> to vector<8x4xf32>
    %129 = arith.addf %126, %128 : vector<8x4xf32>
    %cst_47 = arith.constant dense<0xFF800000> : vector<8xf32>
    %130 = vector.multi_reduction <maximumf>, %129, %cst_47 [1] : vector<8x4xf32> to vector<8xf32>
    %131 = vector.shape_cast %130 : vector<8xf32> to vector<8x1xf32>
    %132 = vector.broadcast %131 : vector<8x1xf32> to vector<8x4xf32>
    %133 = arith.subf %129, %132 : vector<8x4xf32>
    %134 = math.exp %133 : vector<8x4xf32>
    %cst_48 = arith.constant dense<0.000000e+00> : vector<8xf32>
    %135 = vector.multi_reduction <add>, %134, %cst_48 [1] : vector<8x4xf32> to vector<8xf32>
    %136 = vector.shape_cast %135 : vector<8xf32> to vector<8x1xf32>
    %137 = math.log %136 : vector<8x1xf32>
    %138 = vector.broadcast %137 : vector<8x1xf32> to vector<8x4xf32>
    %139 = arith.subf %133, %138 : vector<8x4xf32>
    %c0_49 = arith.constant 0 : index
    %c0_50 = arith.constant 0 : index
    %140 = vector.load %arg8[%c0_49, %c0_50] : memref<8x4xf32, #tpu.memory_space<vmem>>, vector<8x4xf32>
    tpu.vector_store %arg8[%c0_49, %c0_50], %139 {strides = array<i32>} : memref<8x4xf32, #tpu.memory_space<vmem>>, vector<8x4xf32>,
    return
  }
}

</mosaic_0001>

<bundles_post_ra>
// kernel: rnn_classifier_forward.1
= control target key start
LH: loop header
LB: loop body
LE: loop exit
PB: predicated region body
PF: predicated region fallthrough
CT: control target
= control target key end

     0   :  { %vm90_vm0 = vcmask 261120   ;;  %v1284_v5 = vmov 0.0   ;;  %vm1285_vm1 = vmmov 0   ;;  %s1286_s18 = smov 32   ;;  %vm1017_vm2 = vcmask 31744   ;;  %s1573_s1 = inlined_call_operand.vmem [shape: bf16[32,32], index: 1, kind: input, shape index: {}]   ;;  %s1574_s0 = inlined_call_operand.vmem [shape: bf16[64,32], index: 0, kind: input, shape index: {}]   ;;  %s1575_s2 = inlined_call_operand.vmem [shape: bf16[32,64], index: 2, kind: input, shape index: {}]   ;;  %s1576_s5 = inlined_call_operand.vmem [shape: f32[1,32], index: 5, kind: input, shape index: {}]   ;;  %s1577_s4 = inlined_call_operand.vmem [shape: f32[1,32], index: 4, kind: input, shape index: {}]   ;;  %s1578_s3 = inlined_call_operand.vmem [shape: bf16[32,32], index: 3, kind: input, shape index: {}]   ;;  %s1579_s6 = inlined_call_operand.vmem [shape: bf16[32,4], index: 6, kind: input, shape index: {}]   ;;  %s1580_s7 = inlined_call_operand.vmem [shape: f32[1,4], index: 7, kind: input, shape index: {}]   ;;  %s1581_s8 = inlined_call_operand.vmem [shape: f32[8,4], index: 8, kind: output, shape index: {}]  }
   0x1   :  { %v1268_v0 = vld [vmem:[%s1573_s1] sm:$0xff]   ;;  %v1269_v1 = vld [vmem:[%s1573_s1 + $0x8] sm:$0xff]   ;;  %1136 = vmatprep.subr.bf16.mxu1 %v1284_v5  ;;  %1140 = vmatprep.mubr.msk.bf16.mxu1 %vm1285_vm1, %v1284_v5  ;;  %v1275_v16 = vld [vmem:[%s1574_s0 + $0x10] sm:$0xff]  }
   0x2   :  { %1124 = vmatprep.subr.bf16.mxu0 %v1268_v0  ;;  %v1270_v2 = vld [vmem:[%s1574_s0] sm:$0xff]   ;;  %v1271_v3 = vld [vmem:[%s1574_s0 + $0x8] sm:$0xff]   ;;  %v1276_v17 = vld [vmem:[%s1574_s0 + $0x18] sm:$0xff]   ;;  %s1287_s0 = smov 96  }
   0x3   :  { %1125 = vmatpush3.bf16.msra.mxu0 %v1268_v0  ;;  %1128 = vmatprep.mubr.msk.bf16.mxu0 %vm90_vm0, %v1270_v2  ;;  %v1350_v4 = vld [vmem:[%s1575_s2] sm:$0xff]   ;;  %v1359_v6 = vld [vmem:[%s1575_s2 + $0x8] sm:$0xff]  }
   0x4   :  { %1126 = vmatprep.subr.bf16.mxu0 %v1269_v1  ;;  %1137 = vmatpush3.bf16.msra.mxu1 %v1350_v4  ;;  %v1049_v7 = vld [vmem:[%s1576_s5] ss:$0 sm:$0xff]  ;;  %v1400_v19 = vld [vmem:[%s1578_s3 + $0x8] sm:$0xff]  }
   0x5   :  { %1138 = vmatprep.subr.bf16.mxu1 %v1284_v5  ;;  %230 = vrot.lane.b32.xlu0 %v1049_v7, %s1286_s18  ;;  %v1372_v8 = vld [vmem:[%s1577_s4] ss:$0 sm:$0xff] }
   0x6   :  { %v1393_v18 = vld [vmem:[%s1578_s3] sm:$0xff]  }
   0x7   :  { %1127 = vmatpush3.bf16.msra.mxu0 %v1269_v1 }
   0x8   :  { %1152 = vmatprep.subr.bf16.mxu0 %v1284_v5  ;;  %1139 = vmatpush3.bf16.msra.mxu1 %v1359_v6 }
   0x9   :  { %1144 = vmatprep.subr.bf16.mxu1 %v1284_v5 }
   0xa   :  { %1129 = vmatmul.mubr.msk.bf16.vlgmr.msra.gmra.mrb[0].mxu0 %vm90_vm0, %v1271_v3 }
   0xb   :  { %1132 = vmatprep.mubr.msk.bf16.mxu0 %vm90_vm0, %v1275_v16  ;;  %1153 = vmatpush3.bf16.msra.mxu0 %v1393_v18 }
   0xc   :  { %1154 = vmatprep.subr.bf16.mxu0 %v1284_v5 }
   0xf   :  { %1155 = vmatpush3.bf16.msra.mxu0 %v1400_v19 }
  0x10   :  { %1168 = vmatprep.subr.bf16.mxu0 %v1284_v5 }
  0x12   :  { %1133 = vmatmul.mubr.msk.bf16.gmra.mrb[4].mxu0 %vm90_vm0, %v1276_v17 }
  0x13   :  { %1156 = vmatprep.mubr.msk.bf16.mxu0 %vm1285_vm1, %v1284_v5 }
  0x77   :  { %v1408_v20 = vpop.permute.xlu0 %230 }
  0xdd   :  { %v1130_v9 = vpop.f32.mrb[0].mxu0 }
  0xde   :  { %v137_v10 = vpop.f32.mrb[1].mxu0  ;;  %v146_v37 = vadd.f32 %v1130_v9, %v1372_v8 }
  0xdf   :  { %v138_v11 = vadd.f32 %v1372_v8, %v137_v10  ;;  %v1375_v12 = vpop.f32.mrb[2].mxu0 }
  0xe0   :  { %v140_v13 = vpop.f32.mrb[3].mxu0  ;;  %v149_v49 = vadd.f32 %v1375_v12, %v1372_v8 }
  0xe1   :  { %v168_v14 = vmax.f32 %v138_v11, 0.0  ;;  %v141_v21 = vadd.f32 %v1372_v8, %v140_v13 }
  0xe3   :  { %v169_v15 = vpack.c.bf16 %v168_v14, %v168_v14 }
  0xe5   :  { %1141 = vmatmul.mubr.msk.bf16.vlgmr.msra.gmra.mrb[0].mxu1 %vm90_vm0, %v169_v15  ;;  %v1420_v32 = vpop.f32.mrb[4].mxu0 }
  0xe6   :  { %1145 = vmatpush3.bf16.msra.mxu1 %v1350_v4  ;;  %1148 = vmatprep.mubr.msk.bf16.mxu1 %vm1285_vm1, %v1284_v5  ;;  %v153_v33 = vpop.f32.mrb[5].mxu0 }
  0xe7   :  { %1146 = vmatprep.subr.bf16.mxu1 %v1284_v5  ;;  %v1422_v34 = vpop.f32.mrb[6].mxu0  ;;  %v154_v63 = vadd.f32 %v1372_v8, %v153_v33  ;;  %v162_v33 = vadd.f32 %v1420_v32, %v1372_v8 }
  0xe8   :  { %v1424_v35 = vpop.f32.mrb[7].mxu0 }
  0xe9   :  { %v157_v15 = vadd.f32 %v1372_v8, %v1424_v35 }
  0xea   :  { %1147 = vmatpush3.bf16.msra.mxu1 %v1359_v6 }
  0xeb   :  { %1160 = vmatprep.subr.bf16.mxu1 %v1284_v5 }
 0x1b8   :  { %v219_v22 = vpop.f32.mrb[0].mxu1 }
 0x1b9   :  { %v233_v23 = vadd.f32 %v1408_v20, %v219_v22  ;;  %v236_v24 = vadd.f32 %v219_v22, %v141_v21  ;;  %v1142_v25 = vpop.f32.mrb[1].mxu1 }
 0x1ba   :  { %v222_v26 = vpop.f32.mrb[2].mxu1 }
 0x1bb   :  { %v234_v27 = vmax.f32 %v233_v23, 0.0  ;;  %v237_v28 = vmax.f32 %v236_v24, 0.0  ;;  %v1143_v29 = vpop.f32.mrb[3].mxu1 }
 0x1bd   :  { %v235_v30 = vpack.c.bf16 %v234_v27, %v234_v27  ;;  %v238_v31 = vpack.c.bf16 %v237_v28, %v237_v28 }
 0x1bf   :  { %1149 = vmatmul.mubr.msk.bf16.vlgmr.msra.gmra.mrb[4].mxu1 %vm90_vm0, %v238_v31  ;;  %283 = vrot.lane.b32.xlu0 %v235_v30, %s1287_s0 }
 0x1c0   :  { %1161 = vmatpush3.bf16.msra.mxu1 %v1350_v4  ;;  %1164 = vmatprep.mubr.msk.bf16.mxu1 %vm1285_vm1, %v1284_v5 }
 0x1c1   :  { %1162 = vmatprep.subr.bf16.mxu1 %v1284_v5 }
 0x1c4   :  { %1163 = vmatpush3.bf16.msra.mxu1 %v1359_v6 }
 0x1c5   :  { %1176 = vmatprep.subr.bf16.mxu1 %v1284_v5 }
 0x231   :  { %v284_v36 = vpop.permute.xlu0 %283 }
 0x232   :  { %1157 = vmatmul.mubr.msk.bf16.vlgmr.msra.gmra.mrb[8].mxu0 %vm90_vm0, %v284_v36 }
 0x233   :  { %1169 = vmatpush3.bf16.msra.mxu0 %v1393_v18  ;;  %1172 = vmatprep.mubr.msk.bf16.mxu0 %vm1285_vm1, %v1284_v5 }
 0x234   :  { %1170 = vmatprep.subr.bf16.mxu0 %v1284_v5 }
 0x237   :  { %1171 = vmatpush3.bf16.msra.mxu0 %v1400_v19 }
 0x238   :  { %1184 = vmatprep.subr.bf16.mxu0 %v1284_v5 }
 0x292   :  { %v276_v38 = vpop.f32.mrb[4].mxu1 }
 0x293   :  { %v348_v39 = vadd.f32 %v276_v38, %v146_v37  ;;  %v1150_v40 = vpop.f32.mrb[5].mxu1  ;;  %v340_v57 = vadd.f32 %v276_v38, %v1408_v20 }
 0x294   :  { %v279_v41 = vpop.f32.mrb[6].mxu1 }
 0x295   :  { %v349_v42 = vmax.f32 %v348_v39, 0.0  ;;  %v1151_v43 = vpop.f32.mrb[7].mxu1 }
 0x297   :  { %v350_v44 = vpack.c.bf16 %v349_v42, %v349_v42 }
 0x299   :  { %1165 = vmatmul.mubr.msk.bf16.vlgmr.msra.gmra.mrb[8].mxu1 %vm90_vm0, %v350_v44 }
 0x29a   :  { %1177 = vmatpush3.bf16.msra.mxu1 %v1350_v4  ;;  %1180 = vmatprep.mubr.msk.bf16.mxu1 %vm1285_vm1, %v1284_v5 }
 0x29b   :  { %1178 = vmatprep.subr.bf16.mxu1 %v1284_v5 }
 0x29e   :  { %1179 = vmatpush3.bf16.msra.mxu1 %v1359_v6 }
 0x29f   :  { %1192 = vmatprep.subr.bf16.mxu1 %v1284_v5 }
 0x305   :  { %v334_v45 = vpop.f32.mrb[8].mxu0 }
 0x306   :  { %342 = vrot.lane.b32.xlu1 %v334_v45, %s1286_s18  ;;  %v1158_v46 = vpop.f32.mrb[9].mxu0  ;;  %v165_v45 = vadd.f32 %v1422_v34, %v1372_v8 }
 0x307   :  { %v337_v47 = vpop.f32.mrb[10].mxu0 }
 0x308   :  { %v1159_v48 = vpop.f32.mrb[11].mxu0 }
 0x36c   :  { %v388_v50 = vpop.f32.mrb[8].mxu1 }
 0x36d   :  { %v448_v51 = vadd.f32 %v388_v50, %v149_v49  ;;  %v1166_v52 = vpop.f32.mrb[9].mxu1  ;;  %v440_v26 = vadd.f32 %v388_v50, %v1408_v20 }
 0x36e   :  { %v391_v53 = vpop.f32.mrb[10].mxu1 }
 0x36f   :  { %v449_v54 = vmax.f32 %v448_v51, 0.0  ;;  %v1167_v55 = vpop.f32.mrb[11].mxu1 }
 0x371   :  { %v450_v56 = vpack.c.bf16 %v449_v54, %v449_v54 }
 0x373   :  { %1181 = vmatmul.mubr.msk.bf16.vlgmr.msra.gmra.mrb[12].mxu1 %vm90_vm0, %v450_v56 }
 0x374   :  { %1193 = vmatpush3.bf16.msra.mxu1 %v1350_v4  ;;  %1196 = vmatprep.mubr.msk.bf16.mxu1 %vm1285_vm1, %v1284_v5 }
 0x375   :  { %1194 = vmatprep.subr.bf16.mxu1 %v1284_v5 }
 0x378   :  { %v343_v58 = vpop.permute.xlu1 %342  ;;  %1195 = vmatpush3.bf16.msra.mxu1 %v1359_v6 }
 0x379   :  { %v345_v59 = vadd.f32 %v343_v58, %v340_v57  ;;  %1208 = vmatprep.subr.bf16.mxu1 %v1284_v5 }
 0x37b   :  { %v346_v60 = vmax.f32 %v345_v59, 0.0 }
 0x37d   :  { %v347_v61 = vpack.c.bf16 %v346_v60, %v346_v60 }
 0x37f   :  { %395 = vrot.lane.b32.xlu1 %v347_v61, %s1287_s0 }
 0x3f1   :  { %v396_v62 = vpop.permute.xlu1 %395 }
 0x3f2   :  { %1173 = vmatmul.mubr.msk.bf16.vlgmr.msra.gmra.mrb[12].mxu0 %vm90_vm0, %v396_v62 }
 0x3f3   :  { %1185 = vmatpush3.bf16.msra.mxu0 %v1393_v18  ;;  %1188 = vmatprep.mubr.msk.bf16.mxu0 %vm1285_vm1, %v1284_v5 }
 0x3f4   :  { %1186 = vmatprep.subr.bf16.mxu0 %v1284_v5 }
 0x3f7   :  { %1187 = vmatpush3.bf16.msra.mxu0 %v1400_v19 }
 0x3f8   :  { %1200 = vmatprep.subr.bf16.mxu0 %v1284_v5 }
 0x446   :  { %v1461_v0 = vpop.f32.mrb[12].mxu1 }
 0x447   :  { %v548_v1 = vadd.f32 %v1461_v0, %v154_v63  ;;  %v1182_v2 = vpop.f32.mrb[13].mxu1  ;;  %v540_v51 = vadd.f32 %v1461_v0, %v1408_v20 }
 0x448   :  { %v491_v3 = vpop.f32.mrb[14].mxu1 }
 0x449   :  { %v549_v7 = vmax.f32 %v548_v1, 0.0  ;;  %v1183_v9 = vpop.f32.mrb[15].mxu1 }
 0x44b   :  { %v550_v10 = vpack.c.bf16 %v549_v7, %v549_v7 }
 0x44d   :  { %1197 = vmatmul.mubr.msk.bf16.vlgmr.msra.gmra.mrb[16].mxu1 %vm90_vm0, %v550_v10 }
 0x44e   :  { %1209 = vmatpush3.bf16.msra.mxu1 %v1350_v4  ;;  %1212 = vmatprep.mubr.msk.bf16.mxu1 %vm1285_vm1, %v1284_v5 }
 0x44f   :  { %1210 = vmatprep.subr.bf16.mxu1 %v1284_v5 }
 0x452   :  { %1211 = vmatpush3.bf16.msra.mxu1 %v1359_v6 }
 0x453   :  { %1224 = vmatprep.subr.bf16.mxu1 %v1284_v5 }
 0x4c5   :  { %v434_v11 = vpop.f32.mrb[12].mxu0 }
 0x4c6   :  { %442 = vrot.lane.b32.xlu0 %v434_v11, %s1286_s18  ;;  %v1174_v12 = vpop.f32.mrb[13].mxu0 }
 0x4c7   :  { %v437_v13 = vpop.f32.mrb[14].mxu0 }
 0x4c8   :  { %v1175_v14 = vpop.f32.mrb[15].mxu0 }
 0x520   :  { %v1474_v16 = vpop.f32.mrb[16].mxu1 }
 0x521   :  { %v648_v17 = vadd.f32 %v1474_v16, %v157_v15  ;;  %v1198_v21 = vpop.f32.mrb[17].mxu1  ;;  %v640_v63 = vadd.f32 %v1474_v16, %v1408_v20 }
 0x522   :  { %v591_v22 = vpop.f32.mrb[18].mxu1 }
 0x523   :  { %v649_v23 = vmax.f32 %v648_v17, 0.0  ;;  %v1199_v24 = vpop.f32.mrb[19].mxu1 }
 0x525   :  { %v650_v25 = vpack.c.bf16 %v649_v23, %v649_v23 }
 0x527   :  { %1213 = vmatmul.mubr.msk.bf16.vlgmr.msra.gmra.mrb[20].mxu1 %vm90_vm0, %v650_v25 }
 0x528   :  { %1225 = vmatpush3.bf16.msra.mxu1 %v1350_v4  ;;  %1228 = vmatprep.mubr.msk.bf16.mxu1 %vm1285_vm1, %v1284_v5 }
 0x529   :  { %1226 = vmatprep.subr.bf16.mxu1 %v1284_v5 }
 0x52c   :  { %1227 = vmatpush3.bf16.msra.mxu1 %v1359_v6 }
 0x52d   :  { %1240 = vmatprep.subr.bf16.mxu1 %v1284_v5 }
 0x538   :  { %v443_v27 = vpop.permute.xlu0 %442 }
 0x539   :  { %v445_v28 = vadd.f32 %v443_v27, %v440_v26 }
 0x53b   :  { %v446_v29 = vmax.f32 %v445_v28, 0.0 }
 0x53d   :  { %v447_v30 = vpack.c.bf16 %v446_v29, %v446_v29 }
 0x53f   :  { %495 = vrot.lane.b32.xlu1 %v447_v30, %s1287_s0 }
 0x5b1   :  { %v496_v31 = vpop.permute.xlu1 %495 }
 0x5b2   :  { %1189 = vmatmul.mubr.msk.bf16.vlgmr.msra.gmra.mrb[16].mxu0 %vm90_vm0, %v496_v31  ;;  %v1279_v31 = vld [vmem:[%s1579_s6 + $0x8] sm:$0xff]  }
 0x5b3   :  { %1201 = vmatpush3.bf16.msra.mxu0 %v1393_v18  ;;  %1204 = vmatprep.mubr.msk.bf16.mxu0 %vm1285_vm1, %v1284_v5 }
 0x5b4   :  { %1202 = vmatprep.subr.bf16.mxu0 %v1284_v5 }
 0x5b7   :  { %1203 = vmatpush3.bf16.msra.mxu0 %v1400_v19 }
 0x5b8   :  { %1216 = vmatprep.subr.bf16.mxu0 %v1284_v5 }
 0x5fa   :  { %v1495_v35 = vpop.f32.mrb[20].mxu1 }
 0x5fb   :  { %v748_v36 = vadd.f32 %v1495_v35, %v162_v33  ;;  %v1214_v37 = vpop.f32.mrb[21].mxu1  ;;  %v740_v13 = vadd.f32 %v1495_v35, %v1408_v20 }
 0x5fc   :  { %v691_v38 = vpop.f32.mrb[22].mxu1 }
 0x5fd   :  { %v749_v39 = vmax.f32 %v748_v36, 0.0  ;;  %v1215_v40 = vpop.f32.mrb[23].mxu1 }
 0x5ff   :  { %v750_v41 = vpack.c.bf16 %v749_v39, %v749_v39 }
 0x601   :  { %1229 = vmatmul.mubr.msk.bf16.vlgmr.msra.gmra.mrb[24].mxu1 %vm90_vm0, %v750_v41 }
 0x602   :  { %1241 = vmatpush3.bf16.msra.mxu1 %v1350_v4  ;;  %1244 = vmatprep.mubr.msk.bf16.mxu1 %vm1285_vm1, %v1284_v5 }
 0x603   :  { %1242 = vmatprep.subr.bf16.mxu1 %v1284_v5 }
 0x606   :  { %1243 = vmatpush3.bf16.msra.mxu1 %v1359_v6 }
 0x607   :  { %1256 = vmatprep.subr.bf16.mxu1 %v1284_v5 }
 0x685   :  { %v534_v32 = vpop.f32.mrb[16].mxu0 }
 0x686   :  { %542 = vrot.lane.b32.xlu0 %v534_v32, %s1286_s18  ;;  %v1190_v42 = vpop.f32.mrb[17].mxu0 }
 0x687   :  { %v537_v43 = vpop.f32.mrb[18].mxu0 }
 0x688   :  { %v1191_v44 = vpop.f32.mrb[19].mxu0 }
 0x6d4   :  { %v1508_v46 = vpop.f32.mrb[24].mxu1 }
 0x6d5   :  { %v848_v4 = vadd.f32 %v1508_v46, %v165_v45  ;;  %v1230_v47 = vpop.f32.mrb[25].mxu1  ;;  %v840_v26 = vadd.f32 %v1508_v46, %v1408_v20 }
 0x6d6   :  { %v791_v48 = vpop.f32.mrb[26].mxu1 }
 0x6d7   :  { %v849_v49 = vmax.f32 %v848_v4, 0.0  ;;  %v1231_v50 = vpop.f32.mrb[27].mxu1 }
 0x6d9   :  { %v850_v6 = vpack.c.bf16 %v849_v49, %v849_v49 }
 0x6db   :  { %1245 = vmatmul.mubr.msk.bf16.vlgmr.msra.gmra.mrb[28].mxu1 %vm90_vm0, %v850_v6 }
 0x6dc   :  { %1260 = vmatprep.mubr.msk.bf16.mxu1 %vm1285_vm1, %v1284_v5 }
 0x6f8   :  { %v543_v52 = vpop.permute.xlu0 %542 }
 0x6f9   :  { %v545_v53 = vadd.f32 %v543_v52, %v540_v51 }
 0x6fb   :  { %v546_v8 = vmax.f32 %v545_v53, 0.0 }
 0x6fd   :  { %v547_v34 = vpack.c.bf16 %v546_v8, %v546_v8 }
 0x6ff   :  { %595 = vrot.lane.b32.xlu1 %v547_v34, %s1287_s0 }
 0x771   :  { %v596_v54 = vpop.permute.xlu1 %595 }
 0x772   :  { %1205 = vmatmul.mubr.msk.bf16.vlgmr.msra.gmra.mrb[20].mxu0 %vm90_vm0, %v596_v54 }
 0x773   :  { %1217 = vmatpush3.bf16.msra.mxu0 %v1393_v18  ;;  %1220 = vmatprep.mubr.msk.bf16.mxu0 %vm1285_vm1, %v1284_v5 }
 0x774   :  { %1218 = vmatprep.subr.bf16.mxu0 %v1284_v5 }
 0x777   :  { %1219 = vmatpush3.bf16.msra.mxu0 %v1400_v19 }
 0x778   :  { %1232 = vmatprep.subr.bf16.mxu0 %v1284_v5 }
 0x7ae   :  { %v1524_v55 = vpop.f32.mrb[28].mxu1 }
 0x7af   :  { %v1246_v56 = vpop.f32.mrb[29].mxu1  ;;  %v940_v38 = vadd.f32 %v1524_v55, %v1408_v20 }
 0x7b0   :  { %v891_v57 = vpop.f32.mrb[30].mxu1 }
 0x7b1   :  { %v1247_v58 = vpop.f32.mrb[31].mxu1 }
 0x845   :  { %v634_v59 = vpop.f32.mrb[20].mxu0 }
 0x846   :  { %642 = vrot.lane.b32.xlu0 %v634_v59, %s1286_s18  ;;  %v1206_v60 = vpop.f32.mrb[21].mxu0 }
 0x847   :  { %v637_v61 = vpop.f32.mrb[22].mxu0 }
 0x848   :  { %v1207_v62 = vpop.f32.mrb[23].mxu0 }
 0x8b8   :  { %v643_v0 = vpop.permute.xlu0 %642 }
 0x8b9   :  { %v645_v1 = vadd.f32 %v643_v0, %v640_v63 }
 0x8bb   :  { %v646_v2 = vmax.f32 %v645_v1, 0.0 }
 0x8bd   :  { %v647_v3 = vpack.c.bf16 %v646_v2, %v646_v2 }
 0x8bf   :  { %695 = vrot.lane.b32.xlu1 %v647_v3, %s1287_s0 }
 0x931   :  { %v696_v7 = vpop.permute.xlu1 %695 }
 0x932   :  { %1221 = vmatmul.mubr.msk.bf16.vlgmr.msra.gmra.mrb[24].mxu0 %vm90_vm0, %v696_v7 }
 0x933   :  { %1233 = vmatpush3.bf16.msra.mxu0 %v1393_v18  ;;  %1236 = vmatprep.mubr.msk.bf16.mxu0 %vm1285_vm1, %v1284_v5 }
 0x934   :  { %1234 = vmatprep.subr.bf16.mxu0 %v1284_v5 }
 0x937   :  { %1235 = vmatpush3.bf16.msra.mxu0 %v1400_v19 }
 0x938   :  { %1248 = vmatprep.subr.bf16.mxu0 %v1284_v5 }
 0xa05   :  { %v734_v9 = vpop.f32.mrb[24].mxu0 }
 0xa06   :  { %742 = vrot.lane.b32.xlu0 %v734_v9, %s1286_s18  ;;  %v1222_v10 = vpop.f32.mrb[25].mxu0 }
 0xa07   :  { %v737_v11 = vpop.f32.mrb[26].mxu0 }
 0xa08   :  { %v1223_v12 = vpop.f32.mrb[27].mxu0 }
 0xa78   :  { %v743_v14 = vpop.permute.xlu0 %742 }
 0xa79   :  { %v745_v15 = vadd.f32 %v743_v14, %v740_v13 }
 0xa7b   :  { %v746_v16 = vmax.f32 %v745_v15, 0.0 }
 0xa7d   :  { %v747_v17 = vpack.c.bf16 %v746_v16, %v746_v16 }
 0xa7f   :  { %795 = vrot.lane.b32.xlu1 %v747_v17, %s1287_s0 }
 0xaf1   :  { %v796_v21 = vpop.permute.xlu1 %795 }
 0xaf2   :  { %1237 = vmatmul.mubr.msk.bf16.vlgmr.msra.gmra.mrb[28].mxu0 %vm90_vm0, %v796_v21 }
 0xaf3   :  { %1249 = vmatpush3.bf16.msra.mxu0 %v1393_v18  ;;  %1252 = vmatprep.mubr.msk.bf16.mxu0 %vm1285_vm1, %v1284_v5 }
 0xaf4   :  { %1250 = vmatprep.subr.bf16.mxu0 %v1284_v5 }
 0xaf7   :  { %1251 = vmatpush3.bf16.msra.mxu0 %v1400_v19  ;;  %v1278_v19 = vld [vmem:[%s1579_s6] sm:$0xff]  }
 0xaf8   :  { %1257 = vmatpush3.bf16.msra.mxu1 %v1278_v19 }
 0xaf9   :  { %1258 = vmatprep.subr.bf16.mxu1 %v1284_v5  ;;  %v1066_v5 = vld [vmem:[%s1580_s7] ss:$0 sm:$0xff] }
 0xafc   :  { %1259 = vmatpush3.bf16.msra.mxu1 %v1279_v31 }
 0xbc5   :  { %v834_v22 = vpop.f32.mrb[28].mxu0 }
 0xbc6   :  { %842 = vrot.lane.b32.xlu0 %v834_v22, %s1286_s18  ;;  %v1238_v23 = vpop.f32.mrb[29].mxu0 }
 0xbc7   :  { %v837_v24 = vpop.f32.mrb[30].mxu0 }
 0xbc8   :  { %v1239_v25 = vpop.f32.mrb[31].mxu0 }
 0xc38   :  { %v843_v27 = vpop.permute.xlu0 %842 }
 0xc39   :  { %v845_v28 = vadd.f32 %v843_v27, %v840_v26 }
 0xc3b   :  { %v846_v29 = vmax.f32 %v845_v28, 0.0 }
 0xc3d   :  { %v847_v18 = vpack.c.bf16 %v846_v29, %v846_v29 }
 0xc3f   :  { %895 = vrot.lane.b32.xlu1 %v847_v18, %s1287_s0 }
 0xcb1   :  { %v896_v30 = vpop.permute.xlu1 %895 }
 0xcb2   :  { %1253 = vmatmul.mubr.msk.bf16.vlgmr.msra.gmra.mrb[32].mxu0 %vm90_vm0, %v896_v30 }
 0xd85   :  { %v934_v33 = vpop.f32.mrb[32].mxu0 }
 0xd86   :  { %942 = vrot.lane.b32.xlu0 %v934_v33, %s1286_s18  ;;  %v1254_v35 = vpop.f32.mrb[33].mxu0 }
 0xd87   :  { %v937_v36 = vpop.f32.mrb[34].mxu0 }
 0xd88   :  { %v1255_v37 = vpop.f32.mrb[35].mxu0 }
 0xdf8   :  { %v943_v39 = vpop.permute.xlu0 %942 }
 0xdf9   :  { %v945_v40 = vadd.f32 %v943_v39, %v940_v38 }
 0xdfb   :  { %v946_v41 = vmax.f32 %v945_v40, 0.0 }
 0xdfd   :  { %v947_v32 = vpack.c.bf16 %v946_v41, %v946_v41 }
 0xdff   :  { %960 = vrot.lane.b32.xlu1 %v947_v32, %s1287_s0 }
 0xe71   :  { %v961_v42 = vpop.permute.xlu1 %960 }
 0xe72   :  { %1261 = vmatmul.mubr.msk.bf16.vlgmr.msra.gmra.mrb[32].mxu1 %vm90_vm0, %v961_v42 }
 0xf45   :  { %v1011_v43 = vpop.f32.mrb[32].mxu1 }
 0xf46   :  { %v1012_v44 = vadd.f32 %v1066_v5, %v1011_v43  ;;  %v1262_v45 = vpop.f32.mrb[33].mxu1 }
 0xf47   :  { %v1014_v46 = vpop.f32.mrb[34].mxu1 }
 0xf48   :  { %v1263_v4 = vpop.f32.mrb[35].mxu1  ;;  %v1018_v20 = vsel %vm1017_vm2, %v1012_v44, -inf }
 0xf49   :  { %1019 = vmax.xlane.f32.xlu0 %v1018_v20 }
 0xfd6   :  { %v1020_v47 = vpop.xlane.xlu0 %1019 }
 0xfd7   :  { %v1021_v48 = vsub.f32 %v1012_v44, %v1020_v47 }
 0xfd9   :  { %v1022_v49 = vmul.f32 1.442695, %v1021_v48 }
 0xfdb   :  { %1280 = vpow2.f32 %v1022_v49 }
 0xfe5   :  { %v1281_v50 = vpop.eup %1280 }
 0xfe6   :  { %v1024_v6 = vsel %vm1017_vm2, %v1281_v50, 0.0 }
 0xfe7   :  { %1025 = vadd.xlane.f32.xlu1 %v1024_v6 }
0x1074   :  { %v1026_v51 = vpop.xlane.xlu1 %1025 }
0x1075   :  { %1282 = vlog2.f32 %v1026_v51 }
0x107f   :  { %v1283_v52 = vpop.eup %1282 }
0x1080   :  { %v1028_v53 = vmul.f32 0.6931472, %v1283_v52 }
0x1082   :  { %v1029_v8 = vsub.f32 %v1021_v48, %v1028_v53 }
0x1084   :  { %1030 = vst.msk [vmem:[%s1581_s8] sm:$0xff] %vm1017_vm2, %v1029_v8 }

</bundles_post_ra>
